<compile_context>
chip_gen: v5e
topology: v5e:2x2
jax: 0.10.0
libtpu: 0.0.40
codegen_flags: <defaults>
</compile_context>

<pallas_src>
import functools

import jax
import jax.numpy as jnp
from jax.experimental import pallas as pl
from jax.experimental.pallas import tpu as pltpu


def _cdiv(a, b):
    return -(-a // b)


def _round_up(a, m):
    return _cdiv(a, m) * m


def _pick_rows_per_tile(total_rows, bytes_per_row, align, target_bytes):
    """Largest `align`-aligned tile of the row axis such that one block is
    ~<= target_bytes, capped so >= 2 grid steps remain when possible
    (megacore / v7x dual-TensorCore sharding)."""
    if total_rows <= align:
        return total_rows                      # full extent is always legal
    cap = max(align, (target_bytes // max(bytes_per_row, 1)) // align * align)
    half = _round_up(_cdiv(total_rows, 2), align)
    full = _round_up(total_rows, align)
    return max(align, min(cap, half, full))


def _simam_kernel(x_ref, o_ref, *, inv_n, e_lambda, axis):
    # x_ref is either (TR, S) with `axis=1` (spatial on lanes) or (S, TR) with
    # `axis=0` (spatial on sublanes); each row/column along the non-reduced
    # axis is one (quadrant, batch, channel).
    x = x_ref[...]
    xf = x if x.dtype == jnp.float32 else x.astype(jnp.float32)

    # Two-pass statistics: exactly the PyTorch formulation (mean, then
    # (x - mu)^2).  Kernel is HBM-bound, so the extra XLU pass is hidden.
    mu = jnp.mean(xf, axis=axis, keepdims=True)
    d = xf - mu
    sq = d * d

    # Fold 4*(sum(sq)/n + lambda) into ONE per-row reciprocal so the
    # per-element work is a single multiply instead of a divide.
    inv_denom = 0.25 / (jnp.sum(sq, axis=axis, keepdims=True) * inv_n + e_lambda)
    y = sq * inv_denom + 0.5

    # sigmoid lowers to 0.5*tanh(0.5*y)+0.5 -> tanh runs on the EUP slot,
    # no per-element divide on the VALU.
    o_ref[...] = (xf * jax.nn.sigmoid(y)).astype(o_ref.dtype)


def simam_with_slicing(x, e_lambda=1e-4):
    """x: (B, C, H, W), NCHW, same semantics as the PyTorch module."""
    B, C, H, W = x.shape
    bh, bw = H // 2, W // 2
    S = bh * bw                      # spatial extent of one quadrant
    R = 4 * B * C                    # one row per (quadrant, batch, channel)
    inv_n = 1.0 / float(S - 1)
    itemsize = jnp.dtype(x.dtype).itemsize

    # Single fused reshape+transpose into quadrant-flat layout (one HBM copy
    # in, one out).
    x6 = x.reshape(B, C, 2, bh, 2, bw)          # (B, C, qh, h, qw, w)

    target_tile_bytes = 4 << 20
    lane_dense_spatial = (S % 128 == 0)

    if lane_dense_spatial:
        # (rows, S): spatial on lanes, already 128-aligned -> unmasked stores.
        flat = x6.transpose(2, 4, 0, 1, 3, 5).reshape(R, S)
        sub_align = 8 * max(1, 4 // itemsize)   # 8 for f32, 16 for bf16, ...
        tr = _pick_rows_per_tile(R, S * itemsize, sub_align, target_tile_bytes)
        grid = (_cdiv(R, tr),)
        block = (tr, S)
        index_map = lambda i: (i, 0)
        red_axis = 1
    else:
        # Small quadrants (S < 128 or unaligned): put the big 4*B*C axis on
        # lanes (lane-dense stores) and reduce over the sublane axis.
        flat = x6.transpose(3, 5, 2, 4, 0, 1).reshape(S, R)
        tr = _pick_rows_per_tile(R, S * itemsize, 128, target_tile_bytes)
        grid = (_cdiv(R, tr),)
        block = (S, tr)
        index_map = lambda i: (0, i)
        red_axis = 0

    kernel = functools.partial(
        _simam_kernel, inv_n=inv_n, e_lambda=float(e_lambda), axis=red_axis)

    out_flat = pl.pallas_call(
        kernel,
        out_shape=jax.ShapeDtypeStruct(flat.shape, x.dtype),
        grid_spec=pltpu.PrefetchScalarGridSpec(
            num_scalar_prefetch=0,
            grid=grid,
            in_specs=[pl.BlockSpec(block, index_map)],
            out_specs=pl.BlockSpec(block, index_map),
        ),
        compiler_params=pltpu.CompilerParams(
            dimension_semantics=("parallel",),
            # Explicit cap: ~16 MiB of double-buffered blocks + headroom,
            # safe on v5e/v6e (128 MiB) and v7x (64 MiB physical VMEM).
            vmem_limit_bytes=40 * 1024 * 1024,
        ),
    )(flat)

    # Inverse layout change back to NCHW (one fused copy).
    if lane_dense_spatial:
        out = (out_flat.reshape(2, 2, B, C, bh, bw)
               .transpose(2, 3, 0, 4, 1, 5)
               .reshape(B, C, H, W))
    else:
        out = (out_flat.reshape(bh, bw, 2, 2, B, C)
               .transpose(4, 5, 2, 0, 3, 1)
               .reshape(B, C, H, W))
    return out


def _reference(x, e_lambda=1e-4):
    """Pure-JAX reference mirroring the PyTorch forward, for correctness."""
    B, C, H, W = x.shape
    bh, bw = H // 2, W // 2
    n = bh * bw - 1
    quads = [x[:, :, :bh, :bw], x[:, :, :bh, bw:],
             x[:, :, bh:, :bw], x[:, :, bh:, bw:]]
    outs = []
    for blk in quads:
        sq = (blk - blk.mean(axis=(2, 3), keepdims=True)) ** 2
        y = sq / (4.0 * (sq.sum(axis=(2, 3), keepdims=True) / n + e_lambda)) + 0.5
        outs.append(blk * jax.nn.sigmoid(y))
    top = jnp.concatenate([outs[0], outs[1]], axis=3)
    bot = jnp.concatenate([outs[2], outs[3]], axis=3)
    return jnp.concatenate([top, bot], axis=2)


if __name__ == "__main__":
    key = jax.random.PRNGKey(0)

    # Small-quadrant path (S = 64 < 128): rows-on-lanes layout.
    x = jax.random.normal(key, (2, 4, 16, 16), dtype=jnp.float32)
    out = jax.block_until_ready(simam_with_slicing(x))
    ref = _reference(x)
    assert out.shape == x.shape and out.dtype == x.dtype
    assert jnp.allclose(out, ref, atol=1e-5, rtol=1e-5), \
        float(jnp.max(jnp.abs(out - ref)))

    # 128-aligned spatial path (S = 256): spatial-on-lanes layout.
    x2 = jax.random.normal(jax.random.PRNGKey(1), (1, 2, 32, 32),
                           dtype=jnp.float32)
    out2 = jax.block_until_ready(simam_with_slicing(x2))
    ref2 = _reference(x2)
    assert jnp.allclose(out2, ref2, atol=1e-5, rtol=1e-5), \
        float(jnp.max(jnp.abs(out2 - ref2)))

    print("KERNEL_OK")
</pallas_src>

<mosaic_0001>
module attributes {stable_mosaic.version = 11 : i64} {
  func.func @_simam_kernel(%arg0: i32, %arg1: memref<64x32xf32, #tpu.memory_space<vmem>>, %arg2: memref<64x32xf32, #tpu.memory_space<vmem>>) attributes {dimension_semantics = [#tpu.dimension_semantics<parallel>], iteration_bounds = array<i64: 1>, scalar_prefetch = 0 : i64, scratch_operands = 0 : i64, tpu.core_type = #tpu.core_type<tc>, window_params = [{transform_indices = @transform_0, window_bounds = array<i64: 64, 32>}, {transform_indices = @transform_1, window_bounds = array<i64: 64, 32>}]} {
    %c0 = arith.constant 0 : index
    %c0_0 = arith.constant 0 : index
    %0 = vector.load %arg1[%c0, %c0_0] : memref<64x32xf32, #tpu.memory_space<vmem>>, vector<64x32xf32>
    %cst = arith.constant dense<0.000000e+00> : vector<32xf32>
    %1 = vector.multi_reduction <add>, %0, %cst [0] : vector<64x32xf32> to vector<32xf32>
    %2 = vector.shape_cast %1 : vector<32xf32> to vector<1x32xf32>
    %cst_1 = arith.constant 6.400000e+01 : f32
    %3 = vector.broadcast %cst_1 : f32 to vector<1x32xf32>
    %4 = arith.divf %2, %3 : vector<1x32xf32>
    %5 = vector.broadcast %4 : vector<1x32xf32> to vector<64x32xf32>
    %6 = arith.subf %0, %5 : vector<64x32xf32>
    %7 = arith.mulf %6, %6 : vector<64x32xf32>
    %cst_2 = arith.constant dense<0.000000e+00> : vector<32xf32>
    %8 = vector.multi_reduction <add>, %7, %cst_2 [0] : vector<64x32xf32> to vector<32xf32>
    %9 = vector.shape_cast %8 : vector<32xf32> to vector<1x32xf32>
    %cst_3 = arith.constant 0.0158730168 : f32
    %10 = vector.broadcast %cst_3 : f32 to vector<1x32xf32>
    %11 = arith.mulf %9, %10 : vector<1x32xf32>
    %cst_4 = arith.constant 9.99999974E-5 : f32
    %12 = vector.broadcast %cst_4 : f32 to vector<1x32xf32>
    %13 = arith.addf %11, %12 : vector<1x32xf32>
    %cst_5 = arith.constant 2.500000e-01 : f32
    %14 = vector.broadcast %cst_5 : f32 to vector<1x32xf32>
    %15 = arith.divf %14, %13 : vector<1x32xf32>
    %16 = vector.broadcast %15 : vector<1x32xf32> to vector<64x32xf32>
    %17 = arith.mulf %7, %16 : vector<64x32xf32>
    %cst_6 = arith.constant 5.000000e-01 : f32
    %18 = vector.broadcast %cst_6 : f32 to vector<64x32xf32>
    %19 = arith.addf %17, %18 : vector<64x32xf32>
    %20 = arith.negf %19 : vector<64x32xf32>
    %21 = math.exp %20 : vector<64x32xf32>
    %cst_7 = arith.constant 1.000000e+00 : f32
    %22 = vector.broadcast %cst_7 : f32 to vector<64x32xf32>
    %23 = arith.addf %22, %21 : vector<64x32xf32>
    %24 = arith.divf %22, %23 : vector<64x32xf32>
    %25 = arith.mulf %0, %24 : vector<64x32xf32>
    %c0_8 = arith.constant 0 : index
    %c0_9 = arith.constant 0 : index
    %26 = vector.load %arg2[%c0_8, %c0_9] : memref<64x32xf32, #tpu.memory_space<vmem>>, vector<64x32xf32>
    tpu.vector_store %arg2[%c0_8, %c0_9], %25 {strides = array<i32>} : memref<64x32xf32, #tpu.memory_space<vmem>>, vector<64x32xf32>,
    return
  }
  func.func @transform_0(%arg0: i32) -> (i32, i32) {
    %c0_i32 = arith.constant 0 : i32
    %c0_i32_0 = arith.constant 0 : i32
    return %c0_i32, %arg0 : i32, i32
  }
  func.func @transform_1(%arg0: i32) -> (i32, i32) {
    %c0_i32 = arith.constant 0 : i32
    %c0_i32_0 = arith.constant 0 : i32
    return %c0_i32, %arg0 : i32, i32
  }
}

</mosaic_0001>

<bundles_post_ra>
// kernel: tpu_custom_call.1
= control target key start
LH: loop header
LB: loop body
LE: loop exit
PB: predicated region body
PF: predicated region fallthrough
CT: control target
= control target key end

     0   :  { %vm16_vm0 = vcmask 261120   ;;  %v333_v3 = vmov 64.0   ;;  %s569_s0 = inlined_call_operand.vmem [shape: f32[64,32], index: 0, kind: input, shape index: {}]   ;;  %s570_s1 = inlined_call_operand.vmem [shape: f32[64,32], index: 1, kind: output, shape index: {}]  }
   0x1   :  { %v347_v0 = vld [vmem:[%s569_s0] sm:$0xff]  ;;  %v352_v1 = vld [vmem:[%s569_s0 + $0x8] sm:$0xff]  ;;  %v357_v2 = vld [vmem:[%s569_s0 + $0x10] sm:$0xff]  ;;  %297 = vrcp.f32 %v333_v3 }
   0x2   :  { %v362_v4 = vld [vmem:[%s569_s0 + $0x18] sm:$0xff]  ;;  %v17_v5 = vsel %vm16_vm0, %v347_v0, 0.0  ;;  %v18_v6 = vsel %vm16_vm0, %v352_v1, 0.0  ;;  %v20_v7 = vsel %vm16_vm0, %v357_v2, 0.0  ;;  %v373_v8 = vld [vmem:[%s569_s0 + $0x20] sm:$0xff]  ;;  %v380_v11 = vld [vmem:[%s569_s0 + $0x28] sm:$0xff] }
   0x3   :  { %v19_v9 = vadd.f32 %v18_v6, %v17_v5  ;;  %v22_v10 = vsel %vm16_vm0, %v362_v4, 0.0  ;;  %v24_v13 = vsel %vm16_vm0, %v373_v8, 0.0  ;;  %v387_v15 = vld [vmem:[%s569_s0 + $0x30] sm:$0xff]  ;;  %v26_v17 = vsel %vm16_vm0, %v380_v11, 0.0  ;;  %v394_v18 = vld [vmem:[%s569_s0 + $0x38] sm:$0xff] }
   0x4   :  { %v28_v20 = vsel %vm16_vm0, %v387_v15, 0.0  ;;  %v30_v23 = vsel %vm16_vm0, %v394_v18, 0.0 }
   0x5   :  { %v21_v12 = vadd.f32 %v20_v7, %v19_v9 }
   0x7   :  { %v298_v14 = vpop.eup %297  ;;  %v23_v16 = vadd.f32 %v22_v10, %v21_v12 }
   0x8   :  { %v39_v21 = vmul.f32 64.0, %v298_v14  ;;  %vm43_vm1 = vweird.f32 %v298_v14 }
   0x9   :  { %v25_v19 = vadd.f32 %v24_v13, %v23_v16 }
   0xa   :  { %v40_v25 = vsub.f32 1.0, %v39_v21 }
   0xb   :  { %v27_v22 = vadd.f32 %v26_v17, %v25_v19 }
   0xc   :  { %v41_v28 = vmul.f32 %v298_v14, %v40_v25 }
   0xd   :  { %v29_v24 = vadd.f32 %v28_v20, %v27_v22 }
   0xe   :  { %v42_v31 = vadd.f32 %v298_v14, %v41_v28 }
   0xf   :  { %v31_v26 = vadd.f32 %v30_v23, %v29_v24 }
  0x10   :  { %v44_v34 = vsel %vm43_vm1, %v298_v14, %v42_v31 }
  0x11   :  { %v32_v27 = vrot.slane %v31_v26, 4 }
  0x13   :  { %v33_v29 = vadd.f32 %v32_v27, %v31_v26 }
  0x15   :  { %v34_v30 = vrot.slane %v33_v29, 2 }
  0x17   :  { %v35_v32 = vadd.f32 %v34_v30, %v33_v29 }
  0x19   :  { %v36_v33 = vrot.slane %v35_v32, 1 }
  0x1b   :  { %v37_v35 = vadd.f32 %v36_v33, %v35_v32 }
  0x1d   :  { %v45_v36 = vmul.f32 %v44_v34, %v37_v35 }
  0x1f   :  { %v46_v37 = vsub.f32 %v347_v0, %v45_v36  ;;  %v47_v38 = vsub.f32 %v352_v1, %v45_v36  ;;  %v48_v39 = vsub.f32 %v357_v2, %v45_v36  ;;  %v49_v40 = vsub.f32 %v362_v4, %v45_v36 }
  0x20   :  { %v50_v41 = vsub.f32 %v373_v8, %v45_v36  ;;  %v51_v42 = vsub.f32 %v380_v11, %v45_v36  ;;  %v52_v47 = vsub.f32 %v387_v15, %v45_v36  ;;  %v53_v53 = vsub.f32 %v394_v18, %v45_v36 }
  0x21   :  { %v54_v43 = vmul.f32 %v46_v37, %v46_v37  ;;  %v55_v44 = vmul.f32 %v47_v38, %v47_v38  ;;  %v56_v45 = vmul.f32 %v48_v39, %v48_v39  ;;  %v57_v46 = vmul.f32 %v49_v40, %v49_v40 }
  0x22   :  { %v58_v48 = vmul.f32 %v50_v41, %v50_v41  ;;  %v59_v54 = vmul.f32 %v51_v42, %v51_v42  ;;  %v60_v57 = vmul.f32 %v52_v47, %v52_v47  ;;  %v61_v60 = vmul.f32 %v53_v53, %v53_v53 }
  0x23   :  { %v62_v49 = vsel %vm16_vm0, %v54_v43, 0.0  ;;  %v63_v50 = vsel %vm16_vm0, %v55_v44, 0.0  ;;  %v65_v51 = vsel %vm16_vm0, %v56_v45, 0.0  ;;  %v67_v55 = vsel %vm16_vm0, %v57_v46, 0.0 }
  0x24   :  { %v64_v52 = vadd.f32 %v63_v50, %v62_v49  ;;  %v69_v58 = vsel %vm16_vm0, %v58_v48, 0.0  ;;  %v71_v61 = vsel %vm16_vm0, %v59_v54, 0.0  ;;  %v73_v63 = vsel %vm16_vm0, %v60_v57, 0.0 }
  0x25   :  { %v75_v5 = vsel %vm16_vm0, %v61_v60, 0.0 }
  0x26   :  { %v66_v56 = vadd.f32 %v65_v51, %v64_v52 }
  0x28   :  { %v68_v59 = vadd.f32 %v67_v55, %v66_v56 }
  0x2a   :  { %v70_v62 = vadd.f32 %v69_v58, %v68_v59 }
  0x2c   :  { %v72_v3 = vadd.f32 %v71_v61, %v70_v62 }
  0x2e   :  { %v74_v6 = vadd.f32 %v73_v63, %v72_v3 }
  0x30   :  { %v76_v7 = vadd.f32 %v75_v5, %v74_v6 }
  0x32   :  { %v77_v9 = vrot.slane %v76_v7, 4 }
  0x34   :  { %v78_v10 = vadd.f32 %v77_v9, %v76_v7 }
  0x36   :  { %v79_v12 = vrot.slane %v78_v10, 2 }
  0x38   :  { %v80_v13 = vadd.f32 %v79_v12, %v78_v10 }
  0x3a   :  { %v81_v14 = vrot.slane %v80_v13, 1 }
  0x3c   :  { %v82_v16 = vadd.f32 %v81_v14, %v80_v13 }
  0x3e   :  { %v83_v17 = vmul.f32 0.015873017, %v82_v16 }
  0x40   :  { %v84_v19 = vadd.f32 0.0001, %v83_v17 }
  0x42   :  { %299 = vrcp.f32 %v84_v19  ;;  %v96_v22 = vand.u32 2147483648, %v84_v19  ;;  %vm90_vm2 = vweird.f32 %v84_v19  ;;  %v94_v24 = vand.u32 2147483647, %v84_v19 }
  0x44   :  { %v97_v26 = vor.u32 1.1754944e-38, %v96_v22  ;;  %vm95_vm5 = vcmp.eq.f32.partialorder %v94_v24, 8.507059e+37 }
  0x48   :  { %v300_v20 = vpop.eup %299 }
  0x49   :  { %v86_v21 = vmul.f32 %v300_v20, %v84_v19  ;;  %vm91_vm3 = vweird.f32 %v300_v20 }
  0x4a   :  { %vm92_vm4 = vmor %vm90_vm2, %vm91_vm3 }
  0x4b   :  { %v87_v23 = vsub.f32 1.0, %v86_v21 }
  0x4d   :  { %v88_v25 = vmul.f32 %v300_v20, %v87_v23 }
  0x4f   :  { %v89_v27 = vadd.f32 %v300_v20, %v88_v25 }
  0x51   :  { %v93_v28 = vsel %vm92_vm4, %v300_v20, %v89_v27 }
  0x52   :  { %v98_v29 = vsel %vm95_vm5, %v97_v26, %v93_v28 }
  0x53   :  { %v99_v30 = vmul.f32 0.25, %v98_v29 }
  0x55   :  { %v100_v31 = vmul.f32 %v99_v30, %v54_v43  ;;  %v101_v32 = vmul.f32 %v99_v30, %v55_v44  ;;  %v102_v33 = vmul.f32 %v99_v30, %v56_v45  ;;  %v103_v34 = vmul.f32 %v99_v30, %v57_v46 }
  0x56   :  { %v104_v35 = vmul.f32 %v99_v30, %v58_v48  ;;  %v105_v36 = vmul.f32 %v99_v30, %v59_v54  ;;  %v106_v52 = vmul.f32 %v99_v30, %v60_v57  ;;  %v107_v55 = vmul.f32 %v99_v30, %v61_v60 }
  0x57   :  { %v108_v37 = vadd.f32 0.5, %v100_v31  ;;  %v109_v38 = vadd.f32 0.5, %v101_v32  ;;  %v110_v39 = vadd.f32 0.5, %v102_v33  ;;  %v111_v40 = vadd.f32 0.5, %v103_v34 }
  0x58   :  { %v112_v41 = vadd.f32 0.5, %v104_v35  ;;  %v113_v42 = vadd.f32 0.5, %v105_v36  ;;  %v114_v44 = vadd.f32 0.5, %v106_v52  ;;  %v115_v45 = vadd.f32 0.5, %v107_v55 }
  0x59   :  { %v288_v47 = vmul.f32 -1.442695, %v108_v37  ;;  %v289_v49 = vmul.f32 -1.442695, %v109_v38  ;;  %v290_v50 = vmul.f32 -1.442695, %v110_v39 }
  0x5a   :  { %v291_v51 = vmul.f32 -1.442695, %v111_v40  ;;  %v292_v53 = vmul.f32 -1.442695, %v112_v41  ;;  %v293_v43 = vmul.f32 -1.442695, %v113_v42 }
  0x5b   :  { %301 = vpow2.f32 %v288_v47  ;;  %v294_v56 = vmul.f32 -1.442695, %v114_v44  ;;  %v295_v61 = vmul.f32 -1.442695, %v115_v45 }
  0x5c   :  { %303 = vpow2.f32 %v289_v49 }
  0x5d   :  { %305 = vpow2.f32 %v290_v50 }
  0x5e   :  { %307 = vpow2.f32 %v291_v51 }
  0x5f   :  { %309 = vpow2.f32 %v292_v53 }
  0x60   :  { %311 = vpow2.f32 %v293_v43 }
  0x61   :  { %v302_v46 = vpop.eup %301 }
  0x62   :  { %v304_v48 = vpop.eup %303  ;;  %v140_v54 = vadd.f32 1.0, %v302_v46 }
  0x63   :  { %v306_v58 = vpop.eup %305  ;;  %v416_v59 = vadd.f32 1.0, %v304_v48 }
  0x64   :  { %v308_v57 = vpop.eup %307  ;;  %313 = vrcp.f32 %v140_v54  ;;  %v157_v60 = vand.u32 2147483647, %v140_v54  ;;  %v159_v63 = vand.u32 2147483648, %v140_v54  ;;  %v420_v6 = vadd.f32 1.0, %v306_v58 }
  0x65   :  { %v310_v62 = vpop.eup %309  ;;  %315 = vrcp.f32 %v416_v59  ;;  %v172_v5 = vand.u32 2147483647, %v416_v59  ;;  %v422_v7 = vadd.f32 1.0, %v308_v57  ;;  %v174_v9 = vand.u32 2147483648, %v416_v59 }
  0x66   :  { %v312_v3 = vpop.eup %311  ;;  %317 = vpow2.f32 %v294_v56  ;;  %v425_v10 = vadd.f32 1.0, %v310_v62  ;;  %vm153_vm6 = vweird.f32 %v140_v54  ;;  %vm168_vm7 = vweird.f32 %v416_v59 }
  0x67   :  { %319 = vpow2.f32 %v295_v61  ;;  %v189_v12 = vand.u32 2147483648, %v420_v6  ;;  %vm430_vm8 = vcmp.eq.f32.partialorder %v157_v60, 8.507059e+37  ;;  %v160_v14 = vor.u32 1.1754944e-38, %v159_v63 }
  0x68   :  { %321 = vrcp.f32 %v420_v6  ;;  %v187_v16 = vand.u32 2147483647, %v420_v6  ;;  %v436_v17 = vadd.f32 1.0, %v312_v3  ;;  %vm438_vm9 = vcmp.eq.f32.partialorder %v172_v5, 8.507059e+37 }
  0x69   :  { %323 = vrcp.f32 %v422_v7  ;;  %v202_v21 = vand.u32 2147483647, %v422_v7  ;;  %v204_v22 = vand.u32 2147483648, %v422_v7  ;;  %v175_v25 = vor.u32 1.1754944e-38, %v174_v9 }
  0x6a   :  { %v314_v19 = vpop.eup %313  ;;  %325 = vrcp.f32 %v425_v10  ;;  %vm183_vm10 = vweird.f32 %v420_v6  ;;  %vm198_vm11 = vweird.f32 %v422_v7  ;;  %v448_v28 = vor.u32 1.1754944e-38, %v189_v12 }
  0x6b   :  { %v316_v23 = vpop.eup %315  ;;  %v149_v24 = vmul.f32 %v314_v19, %v140_v54  ;;  %v217_v29 = vand.u32 2147483647, %v425_v10  ;;  %v219_v30 = vand.u32 2147483648, %v425_v10  ;;  %vm154_vm12 = vweird.f32 %v314_v19 }
  0x6c   :  { %v318_v26 = vpop.eup %317  ;;  %v164_v27 = vmul.f32 %v316_v23, %v416_v59  ;;  %vm452_vm13 = vcmp.eq.f32.partialorder %v187_v16, 8.507059e+37  ;;  %vm213_vm14 = vweird.f32 %v425_v10  ;;  %327 = vrcp.f32 %v436_v17  ;;  %vm471_vm4 = vmor %vm153_vm6, %vm154_vm12 }
  0x6d   :  { %v320_v31 = vpop.eup %319  ;;  %v150_v32 = vsub.f32 1.0, %v149_v24  ;;  %vm169_vm15 = vweird.f32 %v316_v23  ;;  %vm458_vm1 = vcmp.eq.f32.partialorder %v202_v21, 8.507059e+37  ;;  %v205_v37 = vor.u32 1.1754944e-38, %v204_v22 }
  0x6e   :  { %v322_v34 = vpop.eup %321  ;;  %v165_v35 = vsub.f32 1.0, %v164_v27  ;;  %vm464_vm3 = vcmp.eq.f32.partialorder %v217_v29, 8.507059e+37  ;;  %v232_v42 = vand.u32 2147483647, %v436_v17  ;;  %v220_v52 = vor.u32 1.1754944e-38, %v219_v30  ;;  %vm480_vm5 = vmor %vm168_vm7, %vm169_vm15 }
  0x6f   :  { %v324_v38 = vpop.eup %323  ;;  %v151_v39 = vmul.f32 %v314_v19, %v150_v32  ;;  %v179_v40 = vmul.f32 %v322_v34, %v420_v6  ;;  %v234_v53 = vand.u32 2147483648, %v436_v17  ;;  %vm184_vm2 = vweird.f32 %v322_v34 }
  0x70   :  { %v326_v47 = vpop.eup %325  ;;  %v166_v50 = vmul.f32 %v316_v23, %v165_v35  ;;  %v194_v51 = vmul.f32 %v324_v38, %v422_v7  ;;  %vm199_vm6 = vweird.f32 %v324_v38  ;;  %v146_v57 = vadd.f32 1.0, %v318_v26  ;;  %vm493_vm7 = vmor %vm183_vm10, %vm184_vm2 }
  0x71   :  { %v152_v55 = vadd.f32 %v314_v19, %v151_v39  ;;  %v180_v44 = vsub.f32 1.0, %v179_v40  ;;  %v209_v45 = vmul.f32 %v326_v47, %v425_v10  ;;  %vm214_vm12 = vweird.f32 %v326_v47 }
  0x72   :  { %v167_v46 = vadd.f32 %v316_v23, %v166_v50  ;;  %v195_v48 = vsub.f32 1.0, %v194_v51  ;;  %v328_v54 = vpop.eup %327  ;;  %vm512_vm10 = vmor %vm213_vm14, %vm214_vm12  ;;  %329 = vrcp.f32 %v146_v57  ;;  %v235_v26 = vor.u32 1.1754944e-38, %v234_v53 }
  0x73   :  { %v156_v56 = vsel %vm471_vm4, %v314_v19, %v152_v55  ;;  %v181_v58 = vmul.f32 %v322_v34, %v180_v44  ;;  %v210_v61 = vsub.f32 1.0, %v209_v45  ;;  %v224_v3 = vmul.f32 %v328_v54, %v436_v17 }
  0x74   :  { %v161_v59 = vsel %vm430_vm8, %v160_v14, %v156_v56  ;;  %v171_v62 = vsel %vm480_vm5, %v316_v23, %v167_v46  ;;  %v196_v63 = vmul.f32 %v324_v38, %v195_v48  ;;  %vm504_vm8 = vmor %vm198_vm11, %vm199_vm6  ;;  %vm591_vm11 = vweird.f32 %v436_v17 }
  0x75   :  { %v268_v5 = vmul.f32 %v161_v59, %v347_v0  ;;  %v176_v9 = vsel %vm438_vm9, %v175_v25, %v171_v62  ;;  %v182_v12 = vadd.f32 %v322_v34, %v181_v58  ;;  %v211_v6 = vmul.f32 %v326_v47, %v210_v61 }
  0x76   :  { %v269_v14 = vmul.f32 %v176_v9, %v352_v1  ;;  %v197_v16 = vadd.f32 %v324_v38, %v196_v63  ;;  %v225_v19 = vsub.f32 1.0, %v224_v3  ;;  %vm229_vm9 = vweird.f32 %v328_v54 }
  0x77   :  { %276 = vst.msk [vmem:[%s570_s1] sm:$0xff] %vm16_vm0, %v268_v5  ;;  %v186_v7 = vsel %vm493_vm7, %v322_v34, %v182_v12  ;;  %v212_v20 = vadd.f32 %v326_v47, %v211_v6  ;;  %v147_v1 = vadd.f32 1.0, %v320_v31  ;;  %vm230_vm14 = vmor %vm591_vm11, %vm229_vm9  ;;  %v247_v33 = vand.u32 2147483647, %v146_v57 }
  0x78   :  { %277 = vst.msk [vmem:[%s570_s1 + $0x8] sm:$0xff] %vm16_vm0, %v269_v14  ;;  %v191_v10 = vsel %vm452_vm13, %v448_v28, %v186_v7  ;;  %v201_v21 = vsel %vm504_vm8, %v324_v38, %v197_v16  ;;  %v226_v22 = vmul.f32 %v328_v54, %v225_v19  ;;  %vm233_vm13 = vcmp.eq.f32.partialorder %v232_v42, 8.507059e+37 }
  0x79   :  { %v270_v23 = vmul.f32 %v191_v10, %v357_v2  ;;  %v206_v24 = vsel %vm458_vm1, %v205_v37, %v201_v21  ;;  %v216_v25 = vsel %vm512_vm10, %v326_v47, %v212_v20  ;;  %331 = vrcp.f32 %v147_v1 }
  0x7a   :  { %v271_v27 = vmul.f32 %v206_v24, %v362_v4  ;;  %v221_v28 = vsel %vm464_vm3, %v220_v52, %v216_v25  ;;  %v227_v29 = vadd.f32 %v328_v54, %v226_v22  ;;  %v330_v4 = vpop.eup %329  ;;  %v249_v34 = vand.u32 2147483648, %v146_v57 }
  0x7b   :  { %278 = vst.msk [vmem:[%s570_s1 + $0x10] sm:$0xff] %vm16_vm0, %v270_v23  ;;  %v272_v2 = vmul.f32 %v221_v28, %v373_v8  ;;  %v239_v32 = vmul.f32 %v330_v4, %v146_v57  ;;  %vm243_vm15 = vweird.f32 %v146_v57  ;;  %vm244_vm1 = vweird.f32 %v330_v4 }
  0x7c   :  { %279 = vst.msk [vmem:[%s570_s1 + $0x18] sm:$0xff] %vm16_vm0, %v271_v27  ;;  %v231_v17 = vsel %vm230_vm14, %v328_v54, %v227_v29  ;;  %vm245_vm2 = vmor %vm243_vm15, %vm244_vm1  ;;  %vm248_vm3 = vcmp.eq.f32.partialorder %v247_v33, 8.507059e+37  ;;  %v250_v38 = vor.u32 1.1754944e-38, %v249_v34  ;;  %vm258_vm4 = vweird.f32 %v147_v1 }
  0x7d   :  { %280 = vst.msk [vmem:[%s570_s1 + $0x20] sm:$0xff] %vm16_vm0, %v272_v2  ;;  %v236_v30 = vsel %vm233_vm13, %v235_v26, %v231_v17  ;;  %v240_v8 = vsub.f32 1.0, %v239_v32  ;;  %v264_v39 = vand.u32 2147483648, %v147_v1  ;;  %v262_v41 = vand.u32 2147483647, %v147_v1 }
  0x7e   :  { %v273_v31 = vmul.f32 %v236_v30, %v380_v11 }
  0x7f   :  { %v332_v35 = vpop.eup %331  ;;  %v241_v36 = vmul.f32 %v330_v4, %v240_v8  ;;  %v265_v50 = vor.u32 1.1754944e-38, %v264_v39  ;;  %vm263_vm12 = vcmp.eq.f32.partialorder %v262_v41, 8.507059e+37 }
  0x80   :  { %281 = vst.msk [vmem:[%s570_s1 + $0x28] sm:$0xff] %vm16_vm0, %v273_v31  ;;  %v254_v37 = vmul.f32 %v332_v35, %v147_v1  ;;  %vm259_vm5 = vweird.f32 %v332_v35 }
  0x81   :  { %v242_v11 = vadd.f32 %v330_v4, %v241_v36  ;;  %vm260_vm6 = vmor %vm258_vm4, %vm259_vm5 }
  0x82   :  { %v255_v40 = vsub.f32 1.0, %v254_v37 }
  0x83   :  { %v246_v42 = vsel %vm245_vm2, %v330_v4, %v242_v11 }
  0x84   :  { %v256_v47 = vmul.f32 %v332_v35, %v255_v40  ;;  %v251_v49 = vsel %vm248_vm3, %v250_v38, %v246_v42 }
  0x85   :  { %v274_v51 = vmul.f32 %v251_v49, %v387_v15 }
  0x86   :  { %v257_v52 = vadd.f32 %v332_v35, %v256_v47 }
  0x87   :  { %282 = vst.msk [vmem:[%s570_s1 + $0x30] sm:$0xff] %vm16_vm0, %v274_v51 }
  0x88   :  { %v261_v53 = vsel %vm260_vm6, %v332_v35, %v257_v52 }
  0x89   :  { %v266_v55 = vsel %vm263_vm12, %v265_v50, %v261_v53 }
  0x8a   :  { %v275_v43 = vmul.f32 %v266_v55, %v394_v18 }
  0x8c   :  { %283 = vst.msk [vmem:[%s570_s1 + $0x38] sm:$0xff] %vm16_vm0, %v275_v43 }

</bundles_post_ra>
